<compile_context>
chip_gen: v5e
topology: v5e:2x2
jax: 0.10.0
libtpu: 0.0.40
codegen_flags: <defaults>
</compile_context>

<pallas_src>
import jax
import jax.numpy as jnp
from jax.experimental import pallas as pl
from jax.experimental.pallas import tpu as pltpu


HIDDEN = 256          # per-head hidden width
FUSED = 2 * HIDDEN    # both heads fused side by side
OUT_LANES = 128       # lane-dense output slab width (q1 in lane 0, q2 in lane 1)


def _round_up(x, m):
    return ((x + m - 1) // m) * m


def _critic_kernel(sa_ref, w14_ref, b14_ref, w25_ref, b25_ref,
                   wout_ref, bout_ref, out_ref):
    # Layer 1 of both heads: (TB, K) @ (K, 512) on the MXU, f32 accumulate.
    hg = jnp.dot(sa_ref[...], w14_ref[...], preferred_element_type=jnp.float32)
    hg = jnp.maximum(hg + b14_ref[...], 0.0)                     # (TB, 512) f32

    # Layer 2 of both heads: one block-diagonal (512, 512) weight, one MXU pass.
    hg = jnp.dot(hg.astype(jnp.bfloat16), w25_ref[...],
                 preferred_element_type=jnp.float32)
    hg = jnp.maximum(hg + b25_ref[...], 0.0)                     # (TB, 512) f32

    # Output heads on the MXU with a lane-padded (512, 128) projection:
    #   lane 0 = w3 (rows 0:256), lane 1 = w6 (rows 256:512), rest zero.
    # Single lane-dense (TB, 128) store instead of two masked (TB, 1) stores.
    out_ref[...] = (
        jnp.dot(hg.astype(jnp.bfloat16), wout_ref[...],
                preferred_element_type=jnp.float32) + bout_ref[...])


def critic_forward(state, action, packed, *, block_b=2048):
    """state: [B, state_dim], action: [B, action_dim] -> (q1 [B,1], q2 [B,1])."""
    B = state.shape[0]

    # torch.cat([state, action], 1) + bf16 MXU cast done once in the wrapper:
    # one streamed activation array per grid step instead of two narrow ones.
    sa = jnp.concatenate([state, action], axis=1).astype(jnp.bfloat16)
    K = sa.shape[1]

    # Batch tile: large enough to amortize the per-step pipeline overhead, but
    # split into >= 2 grid steps when B allows so the "parallel" axis can be
    # sharded across both TensorCores on multi-TC chips (v7x).
    TB = min(_round_up(block_b, 8), max(8, _round_up(pl.cdiv(B, 2), 8)))
    grid = (pl.cdiv(B, TB),)

    # Constant index_map => block DMA'd once, stays resident in VMEM across the
    # whole grid (weights are ~0.7 MB total).
    resident = lambda shape: pl.BlockSpec(shape, lambda i: (0, 0))

    out = pl.pallas_call(
        _critic_kernel,
        out_shape=jax.ShapeDtypeStruct((B, OUT_LANES), jnp.float32),
        grid=grid,
        in_specs=[
            pl.BlockSpec((TB, K), lambda i: (i, 0)),    # streamed [state|action] tile (bf16)
            resident((K, FUSED)),                       # w1|w4              (bf16)
            resident((1, FUSED)),                       # b1|b4              (f32)
            resident((FUSED, FUSED)),                   # block-diag w2/w5   (bf16)
            resident((1, FUSED)),                       # b2|b5              (f32)
            resident((FUSED, OUT_LANES)),               # lane-padded w3/w6  (bf16)
            resident((1, OUT_LANES)),                   # lane-padded b3/b6  (f32)
        ],
        out_specs=pl.BlockSpec((TB, OUT_LANES), lambda i: (i, 0)),
        compiler_params=pltpu.CompilerParams(
            dimension_semantics=("parallel",),
            vmem_limit_bytes=48 * 1024 * 1024),
    )(sa, packed["w14"], packed["b14"], packed["w25"], packed["b25"],
      packed["wout"], packed["bout"])

    # Lane-dense slab -> the two Q columns.
    return out[:, 0:1], out[:, 1:2]


def init_critic_params(key, state_dim, action_dim):
    """Deterministic init mimicking nn.Linear default (uniform +-1/sqrt(fan_in)).

    Weights stored as [in_features, out_features] (transposed vs PyTorch)."""
    dims = [
        ("w1", "b1", state_dim + action_dim, HIDDEN),
        ("w2", "b2", HIDDEN, HIDDEN),
        ("w3", "b3", HIDDEN, 1),
        ("w4", "b4", state_dim + action_dim, HIDDEN),
        ("w5", "b5", HIDDEN, HIDDEN),
        ("w6", "b6", HIDDEN, 1),
    ]
    params = {}
    for wname, bname, fan_in, fan_out in dims:
        key, kw, kb = jax.random.split(key, 3)
        bound = 1.0 / jnp.sqrt(jnp.float32(fan_in))
        params[wname] = jax.random.uniform(
            kw, (fan_in, fan_out), jnp.float32, -bound, bound)
        params[bname] = jax.random.uniform(
            kb, (1, fan_out), jnp.float32, -bound, bound)
    return params


def pack_critic_params(params):
    """Rearrange PyTorch-style params into the kernel-ready fused/padded layout."""
    # Layer 1 of both heads, fused along the output dim: (K, 512).
    w14 = jnp.concatenate([params["w1"], params["w4"]], axis=1)
    b14 = jnp.concatenate([params["b1"], params["b4"]], axis=1)          # (1, 512)

    # Layer 2 of both heads as a block-diagonal (512, 512) weight.
    z = jnp.zeros((HIDDEN, HIDDEN), jnp.float32)
    w25 = jnp.concatenate(
        [jnp.concatenate([params["w2"], z], axis=1),
         jnp.concatenate([z, params["w5"]], axis=1)], axis=0)            # (512, 512)
    b25 = jnp.concatenate([params["b2"], params["b5"]], axis=1)          # (1, 512)

    # Lane-padded output projection: lane 0 = q1 head, lane 1 = q2 head.
    wout = jnp.zeros((FUSED, OUT_LANES), jnp.float32)
    wout = wout.at[:HIDDEN, 0].set(params["w3"][:, 0])
    wout = wout.at[HIDDEN:, 1].set(params["w6"][:, 0])
    bout = jnp.zeros((1, OUT_LANES), jnp.float32)
    bout = bout.at[0, 0].set(params["b3"][0, 0])
    bout = bout.at[0, 1].set(params["b6"][0, 0])

    return {
        "w14": w14.astype(jnp.bfloat16),
        "b14": b14,
        "w25": w25.astype(jnp.bfloat16),
        "b25": b25,
        "wout": wout.astype(jnp.bfloat16),
        "bout": bout,
    }


def critic_forward_ref(state, action, params):
    """Pure-JAX f32 reference for correctness checking."""
    sa = jnp.concatenate([state, action], axis=1)
    h = jnp.maximum(sa @ params["w1"] + params["b1"], 0.0)
    h = jnp.maximum(h @ params["w2"] + params["b2"], 0.0)
    q1 = h @ params["w3"] + params["b3"]
    g = jnp.maximum(sa @ params["w4"] + params["b4"], 0.0)
    g = jnp.maximum(g @ params["w5"] + params["b5"], 0.0)
    q2 = g @ params["w6"] + params["b6"]
    return q1, q2


if __name__ == "__main__":
    # Small synthetic shapes consistent with the RL module.
    batch = 2
    state_dim = 10
    action_dim = 2

    key = jax.random.PRNGKey(0)
    kp, ks, ka = jax.random.split(key, 3)

    params = init_critic_params(kp, state_dim, action_dim)
    packed = pack_critic_params(params)

    state = jax.random.normal(ks, (batch, state_dim), jnp.float32)
    action = jax.random.normal(ka, (batch, action_dim), jnp.float32)

    q1, q2 = critic_forward(state, action, packed)
    q1 = jax.block_until_ready(q1)
    q2 = jax.block_until_ready(q2)

    q1_ref, q2_ref = critic_forward_ref(state, action, params)
    assert q1.shape == (batch, 1) and q2.shape == (batch, 1)
    # bf16 MXU operands -> relaxed tolerance vs. the f32 reference.
    assert jnp.allclose(q1, q1_ref, atol=5e-2, rtol=5e-2)
    assert jnp.allclose(q2, q2_ref, atol=5e-2, rtol=5e-2)

    # Exercise the batch grid (multiple tiles + a partial last tile).
    B2 = 200
    ks2, ka2 = jax.random.split(jax.random.PRNGKey(1))
    state2 = jax.random.normal(ks2, (B2, state_dim), jnp.float32)
    action2 = jax.random.normal(ka2, (B2, action_dim), jnp.float32)
    q1b, q2b = critic_forward(state2, action2, packed, block_b=64)
    q1b = jax.block_until_ready(q1b)
    q2b = jax.block_until_ready(q2b)
    q1b_ref, q2b_ref = critic_forward_ref(state2, action2, params)
    assert q1b.shape == (B2, 1) and q2b.shape == (B2, 1)
    assert jnp.allclose(q1b, q1b_ref, atol=5e-2, rtol=5e-2)
    assert jnp.allclose(q2b, q2b_ref, atol=5e-2, rtol=5e-2)

    print("KERNEL_OK")
</pallas_src>

<mosaic_0001>
module attributes {stable_mosaic.version = 11 : i64} {
  func.func @_critic_kernel(%arg0: i32, %arg1: memref<8x12xbf16, #tpu.memory_space<vmem>>, %arg2: memref<12x512xbf16, #tpu.memory_space<vmem>>, %arg3: memref<1x512xf32, #tpu.memory_space<vmem>>, %arg4: memref<512x512xbf16, #tpu.memory_space<vmem>>, %arg5: memref<1x512xf32, #tpu.memory_space<vmem>>, %arg6: memref<512x128xbf16, #tpu.memory_space<vmem>>, %arg7: memref<1x128xf32, #tpu.memory_space<vmem>>, %arg8: memref<8x128xf32, #tpu.memory_space<vmem>>) attributes {dimension_semantics = [#tpu.dimension_semantics<parallel>], iteration_bounds = array<i64: 1>, scalar_prefetch = 0 : i64, scratch_operands = 0 : i64, tpu.core_type = #tpu.core_type<tc>, window_params = [{transform_indices = @transform_0, window_bounds = array<i64: 8, 12>}, {pipeline_mode = #tpu.pipeline_mode<synchronous>, transform_indices = @transform_1, window_bounds = array<i64: 12, 512>}, {pipeline_mode = #tpu.pipeline_mode<synchronous>, transform_indices = @transform_2, window_bounds = array<i64: 1, 512>}, {pipeline_mode = #tpu.pipeline_mode<synchronous>, transform_indices = @transform_3, window_bounds = array<i64: 512, 512>}, {pipeline_mode = #tpu.pipeline_mode<synchronous>, transform_indices = @transform_4, window_bounds = array<i64: 1, 512>}, {pipeline_mode = #tpu.pipeline_mode<synchronous>, transform_indices = @transform_5, window_bounds = array<i64: 512, 128>}, {pipeline_mode = #tpu.pipeline_mode<synchronous>, transform_indices = @transform_6, window_bounds = array<i64: 1, 128>}, {transform_indices = @transform_7, window_bounds = array<i64: 8, 128>}]} {
    %c0 = arith.constant 0 : index
    %c0_0 = arith.constant 0 : index
    %0 = vector.load %arg1[%c0, %c0_0] : memref<8x12xbf16, #tpu.memory_space<vmem>>, vector<8x12xbf16>
    %c0_1 = arith.constant 0 : index
    %c0_2 = arith.constant 0 : index
    %1 = vector.load %arg2[%c0_1, %c0_2] : memref<12x512xbf16, #tpu.memory_space<vmem>>, vector<12x512xbf16>
    %cst = arith.constant dense<0.000000e+00> : vector<8x512xf32>
    %2 = tpu.matmul %0, %1, %cst {dimension_numbers = #tpu.dot_dimension_numbers<[1], [0], [0], [1], [0, 0, 1, 1], [], []>} : vector<8x12xbf16>, vector<12x512xbf16>, vector<8x512xf32> -> vector<8x512xf32>
    %c0_3 = arith.constant 0 : index
    %c0_4 = arith.constant 0 : index
    %3 = vector.load %arg3[%c0_3, %c0_4] : memref<1x512xf32, #tpu.memory_space<vmem>>, vector<1x512xf32>
    %4 = vector.broadcast %3 : vector<1x512xf32> to vector<8x512xf32>
    %5 = arith.addf %2, %4 : vector<8x512xf32>
    %cst_5 = arith.constant 0.000000e+00 : f32
    %6 = vector.broadcast %cst_5 : f32 to vector<8x512xf32>
    %7 = arith.maximumf %5, %6 : vector<8x512xf32>
    %8 = arith.truncf %7 : vector<8x512xf32> to vector<8x512xbf16>
    %c0_6 = arith.constant 0 : index
    %c0_7 = arith.constant 0 : index
    %9 = vector.load %arg4[%c0_6, %c0_7] : memref<512x512xbf16, #tpu.memory_space<vmem>>, vector<512x512xbf16>
    %cst_8 = arith.constant dense<0.000000e+00> : vector<8x512xf32>
    %10 = tpu.matmul %8, %9, %cst_8 {dimension_numbers = #tpu.dot_dimension_numbers<[1], [0], [0], [1], [0, 0, 1, 1], [], []>} : vector<8x512xbf16>, vector<512x512xbf16>, vector<8x512xf32> -> vector<8x512xf32>
    %c0_9 = arith.constant 0 : index
    %c0_10 = arith.constant 0 : index
    %11 = vector.load %arg5[%c0_9, %c0_10] : memref<1x512xf32, #tpu.memory_space<vmem>>, vector<1x512xf32>
    %12 = vector.broadcast %11 : vector<1x512xf32> to vector<8x512xf32>
    %13 = arith.addf %10, %12 : vector<8x512xf32>
    %cst_11 = arith.constant 0.000000e+00 : f32
    %14 = vector.broadcast %cst_11 : f32 to vector<8x512xf32>
    %15 = arith.maximumf %13, %14 : vector<8x512xf32>
    %16 = arith.truncf %15 : vector<8x512xf32> to vector<8x512xbf16>
    %c0_12 = arith.constant 0 : index
    %c0_13 = arith.constant 0 : index
    %17 = vector.load %arg6[%c0_12, %c0_13] : memref<512x128xbf16, #tpu.memory_space<vmem>>, vector<512x128xbf16>
    %cst_14 = arith.constant dense<0.000000e+00> : vector<8x128xf32>
    %18 = tpu.matmul %16, %17, %cst_14 {dimension_numbers = #tpu.dot_dimension_numbers<[1], [0], [0], [1], [0, 0, 1, 1], [], []>} : vector<8x512xbf16>, vector<512x128xbf16>, vector<8x128xf32> -> vector<8x128xf32>
    %c0_15 = arith.constant 0 : index
    %c0_16 = arith.constant 0 : index
    %19 = vector.load %arg7[%c0_15, %c0_16] : memref<1x128xf32, #tpu.memory_space<vmem>>, vector<1x128xf32>
    %20 = vector.broadcast %19 : vector<1x128xf32> to vector<8x128xf32>
    %21 = arith.addf %18, %20 : vector<8x128xf32>
    %c0_17 = arith.constant 0 : index
    %c0_18 = arith.constant 0 : index
    %22 = vector.load %arg8[%c0_17, %c0_18] : memref<8x128xf32, #tpu.memory_space<vmem>>, vector<8x128xf32>
    tpu.vector_store %arg8[%c0_17, %c0_18], %21 {strides = array<i32>} : memref<8x128xf32, #tpu.memory_space<vmem>>, vector<8x128xf32>,
    return
  }
  func.func @transform_0(%arg0: i32) -> (i32, i32) {
    %c0_i32 = arith.constant 0 : i32
    %c0_i32_0 = arith.constant 0 : i32
    return %arg0, %c0_i32 : i32, i32
  }
  func.func @transform_1(%arg0: i32) -> (i32, i32) {
    %c0_i32 = arith.constant 0 : i32
    %c0_i32_0 = arith.constant 0 : i32
    %c0_i32_1 = arith.constant 0 : i32
    return %c0_i32, %c0_i32_0 : i32, i32
  }
  func.func @transform_2(%arg0: i32) -> (i32, i32) {
    %c0_i32 = arith.constant 0 : i32
    %c0_i32_0 = arith.constant 0 : i32
    %c0_i32_1 = arith.constant 0 : i32
    return %c0_i32, %c0_i32_0 : i32, i32
  }
  func.func @transform_3(%arg0: i32) -> (i32, i32) {
    %c0_i32 = arith.constant 0 : i32
    %c0_i32_0 = arith.constant 0 : i32
    %c0_i32_1 = arith.constant 0 : i32
    return %c0_i32, %c0_i32_0 : i32, i32
  }
  func.func @transform_4(%arg0: i32) -> (i32, i32) {
    %c0_i32 = arith.constant 0 : i32
    %c0_i32_0 = arith.constant 0 : i32
    %c0_i32_1 = arith.constant 0 : i32
    return %c0_i32, %c0_i32_0 : i32, i32
  }
  func.func @transform_5(%arg0: i32) -> (i32, i32) {
    %c0_i32 = arith.constant 0 : i32
    %c0_i32_0 = arith.constant 0 : i32
    %c0_i32_1 = arith.constant 0 : i32
    return %c0_i32, %c0_i32_0 : i32, i32
  }
  func.func @transform_6(%arg0: i32) -> (i32, i32) {
    %c0_i32 = arith.constant 0 : i32
    %c0_i32_0 = arith.constant 0 : i32
    %c0_i32_1 = arith.constant 0 : i32
    return %c0_i32, %c0_i32_0 : i32, i32
  }
  func.func @transform_7(%arg0: i32) -> (i32, i32) {
    %c0_i32 = arith.constant 0 : i32
    %c0_i32_0 = arith.constant 0 : i32
    return %arg0, %c0_i32 : i32, i32
  }
}

</mosaic_0001>

<bundles_post_ra>
// kernel: tpu_custom_call.1
= control target key start
LH: loop header
LB: loop body
LE: loop exit
PB: predicated region body
PF: predicated region fallthrough
CT: control target
= control target key end

     0   :  { %12 = vsyncpa [#allocation3], 0  ;;  %s2702_s0 = inlined_call_operand.hbm [shape: bf16[2,12], index: 0, kind: input, shape index: {}]   ;;  %s2703_s1 = inlined_call_operand.hbm [shape: bf16[12,512], index: 1, kind: input, shape index: {}]   ;;  %s2704_s2 = inlined_call_operand.hbm [shape: f32[1,512], index: 2, kind: input, shape index: {}]   ;;  %s2705_s3 = inlined_call_operand.hbm [shape: bf16[512,512], index: 3, kind: input, shape index: {}]   ;;  %s2706_s4 = inlined_call_operand.hbm [shape: f32[1,512], index: 4, kind: input, shape index: {}]   ;;  %s2707_s5 = inlined_call_operand.hbm [shape: bf16[512,128], index: 5, kind: input, shape index: {}]   ;;  %s2708_s6 = inlined_call_operand.vmem [shape: f32[1,128], index: 6, kind: input, shape index: {}]   ;;  %s2709_s7 = inlined_call_operand.hbm [shape: f32[2,128], index: 7, kind: output, shape index: {}]  }
   0x1   :  { %13 = vsyncpa [#allocation6], 0 }
   0x2   :  { %14 = vsyncpa [#allocation9], 0 }
   0x3   :  { %15 = vsyncpa [#allocation12], 0 }
   0x4   :  { %16 = vsyncpa [#allocation4], 0  ;;  %s34_s26 = sshll.u32 %s2703_s1, 4  ;;  %s35_s26 = int_to_ptr.hbm [resolvable:$true] %s34_s26 }
   0x5   :  { %20 = vsyncadd [#allocation3], 48  ;;  %s2586_s27 = smov [#allocation5]   ;;  %s58_s8 = sshll.u32 %s2705_s3, 4  ;;  %s59_s8 = int_to_ptr.hbm [resolvable:$true] %s58_s8 }
   0x6   :  { %s36_s28 = sshll.u32 %s2586_s27, 4  ;;  %s2587_s9 = smov 256   ;;  %s37_s28 = int_to_ptr.vmem [resolvable:$true] %s36_s28 }
   0x7   :  { %s2588_s10 = smov 16   ;;  %s2589_s11 = smov [#allocation8]  }
   0x8   :  { %42 = dma.hbm_to_vmem [thread:$0]  %s35_s26, 512, %s37_s28, [#allocation6], %s2587_s9, %s2587_s9, %s2588_s10  }
   0x9   :  { %s60_s12 = sshll.u32 %s2589_s11, 4  ;;  %s21_s15 = sshll.u32 %s2702_s0, 4  ;;  %s61_s12 = int_to_ptr.vmem [resolvable:$true] %s60_s12  ;;  %s22_s15 = int_to_ptr.hbm [resolvable:$true] %s21_s15 }
   0xa   :  { %66 = dma.hbm_to_vmem [thread:$0]  %s59_s8, 16384, %s61_s12, [#allocation9], %s2587_s9, %s2587_s9, %s2588_s10  }
   0xb   :  { %s2590_s1 = smov [#allocation2]   ;;  %s48_s19 = sshll.u32 %s2704_s2, 4  ;;  %s49_s19 = int_to_ptr.hbm [resolvable:$true] %s48_s19 }
   0xc   :  { %s23_s16 = sshll.u32 %s2590_s1, 4  ;;  %s2591_s3 = smov 1   ;;  %s24_s16 = int_to_ptr.vmem [resolvable:$true] %s23_s16 }
   0xd   :  { %29 = dma.hbm_to_vmem [thread:$0]  %s22_s15, 16, %s24_s16, [#allocation3], %s2588_s10, %s2588_s10, %s2591_s3  }
   0xe   :  { %s72_s22 = sshll.u32 %s2706_s4, 4  ;;  %s2592_s23 = smov [#allocation7]   ;;  %s73_s22 = int_to_ptr.hbm [resolvable:$true] %s72_s22 }
   0xf   :  { %s50_s24 = sshll.u32 %s2592_s23, 4  ;;  %s2593_s0 = smov [#allocation10]   ;;  %s51_s24 = int_to_ptr.vmem [resolvable:$true] %s50_s24 }
  0x10   :  { %53 = dma.hbm_to_vmem [thread:$0]  %s49_s19, 64, %s51_s24, [#allocation6]  }
  0x11   :  { %s74_s25 = sshll.u32 %s2593_s0, 4  ;;  %s82_s28 = sshll.u32 %s2707_s5, 4  ;;  %s75_s25 = int_to_ptr.vmem [resolvable:$true] %s74_s25  ;;  %s83_s28 = int_to_ptr.hbm [resolvable:$true] %s82_s28 }
  0x12   :  { %77 = dma.hbm_to_vmem [thread:$0]  %s73_s22, 64, %s75_s25, [#allocation9]  }
  0x13   :  { %s2594_s2 = smov [#allocation11]   ;;  %s2595_s30 = smov 64  }
  0x14   :  { %s84_s29 = sshll.u32 %s2594_s2, 4  ;;  %s2596_s8 = smov 4   ;;  %s85_s29 = int_to_ptr.vmem [resolvable:$true] %s84_s29 }
  0x15   :  { %90 = dma.hbm_to_vmem [thread:$0]  %s83_s28, 4096, %s85_s29, [#allocation12], %s2595_s30, %s2595_s30, %s2596_s8  }
  0x16   :  { %2576 = dma.done.wait [#allocation3], 64  }
  0x17   :  { %2577 = vsyncadd [#allocation3], 4294967232 }
  0x18   :  { %2578 = dma.done.wait [#allocation6], 576  }
  0x19   :  { %2579 = vsyncadd [#allocation6], 4294966720 }
  0x1a   :  { %2580 = dma.done.wait [#allocation9], 16448  }
  0x1b   :  { %2581 = vsyncadd [#allocation9], 4294950848 }
  0x1c   :  { %2582 = dma.done.wait [#allocation12], 4096  }
  0x1d   :  { %2583 = vsyncadd [#allocation12], 4294963200  ;;  %vm167_vm0 = vcmask 1045504   ;;  %v1571_v0 = vld [vmem:[#allocation5] sm:$0xf]  ;;  %vm164_vm1 = vcmask 97280  }
  0x1e   :  { %v2231_v1 = vld [vmem:[#allocation5 + $0xc] sm:$0x30]  ;;  %v2229_v2 = vld [vmem:[#allocation5 + $0x4] sm:$0xf]  ;;  %v1573_v4 = vld [vmem:[#allocation5 + $0x10] sm:$0x30] }
  0x1f   :  { %v1572_v3 = vor.u32 %v2231_v1, %v1571_v0  ;;  %v1579_v5 = vld [vmem:[#allocation5 + $0x8] sm:$0xf]  ;;  %v2232_v6 = vld [vmem:[#allocation5 + $0x14] sm:$0x30]  ;;  %v1576_v7 = vor.u32 %v2229_v2, %v1573_v4  ;;  %v2230_v9 = vld [vmem:[#allocation5 + $0xc] sm:$0xf] }
  0x20   :  { %v1580_v8 = vor.u32 %v2232_v6, %v1579_v5  ;;  %v1581_v10 = vld [vmem:[#allocation5 + $0x18] sm:$0x30]  ;;  %v120_v15 = vld [vmem:[#allocation2 + $0x2] sm:$0x1]  ;;  %v121_v18 = vld [vmem:[#allocation2 + $0x3] sm:$0x1] }
  0x21   :  { %v118_v11 = vld [vmem:[#allocation2] sm:$0x1]  ;;  %v169_v12 = vsel %vm167_vm0, %v1572_v3, 0  ;;  %v1584_v13 = vor.u32 %v2230_v9, %v1581_v10  ;;  %v119_v14 = vld [vmem:[#allocation2 + $0x1] sm:$0x1]  ;;  %v172_v16 = vsel %vm167_vm0, %v1576_v7, 0 }
  0x22   :  { %187 = vmatpush.bf16.msra.mxu0 %v169_v12  ;;  %v175_v17 = vsel %vm167_vm0, %v1580_v8, 0  ;;  %137 = vst [vmem:[#allocation1] ss:$9 sm:$0xff] %v118_v11  ;;  %200 = vmatpush.bf16.msra.mxu1 %v172_v16  ;;  %v1703_v20 = vld [vmem:[#allocation8 + $0xe0] sm:$0xf] }
  0x23   :  { %213 = vmatpush.bf16.msra.mxu2 %v175_v17  ;;  %v178_v19 = vsel %vm167_vm0, %v1584_v13, 0  ;;  %140 = vst [vmem:[#allocation1 + $0x1] ss:$9 sm:$0xff] %v119_v14  ;;  %v2263_v21 = vld [vmem:[#allocation8 + $0xec] sm:$0xf0] }
  0x24   :  { %226 = vmatpush.bf16.msra.mxu3 %v178_v19  ;;  %143 = vst [vmem:[#allocation1 + $0x2] ss:$9 sm:$0xff] %v120_v15  ;;  %v1831_v22 = vld [vmem:[#allocation8 + $0x1e0] sm:$0xf]  ;;  %v1704_v23 = vor.u32 %v2263_v21, %v1703_v20  ;;  %v2295_v24 = vld [vmem:[#allocation8 + $0x1ec] sm:$0xf0] }
  0x25   :  { %146 = vst [vmem:[#allocation1 + $0x3] ss:$9 sm:$0xff] %v121_v18  ;;  %v1687_v25 = vld [vmem:[#allocation8 + $0xc0] sm:$0xf]  ;;  %v1832_v26 = vor.u32 %v2295_v24, %v1831_v22  ;;  %v2259_v27 = vld [vmem:[#allocation8 + $0xcc] sm:$0xf0] }
  0x26   :  { %v1815_v28 = vld [vmem:[#allocation8 + $0x1c0] sm:$0xf]  ;;  %v2291_v29 = vld [vmem:[#allocation8 + $0x1cc] sm:$0xf0]  ;;  %1018 = vmatpush.bf16.msrb.mxu0 %v1704_v23  ;;  %v1688_v30 = vor.u32 %v2259_v27, %v1687_v25 }
  0x27   :  { %v1959_v31 = vld [vmem:[#allocation8 + $0x2e0] sm:$0xf]  ;;  %v2327_v32 = vld [vmem:[#allocation8 + $0x2ec] sm:$0xf0]  ;;  %1031 = vmatpush.bf16.msrb.mxu1 %v1832_v26  ;;  %v1816_v34 = vor.u32 %v2291_v29, %v1815_v28 }
  0x28   :  { %v2087_v33 = vld [vmem:[#allocation8 + $0x3e0] sm:$0xf]  ;;  %v1960_v35 = vor.u32 %v2327_v32, %v1959_v31  ;;  %v2359_v36 = vld [vmem:[#allocation8 + $0x3ec] sm:$0xf0] }
  0x29   :  { %v1671_v37 = vld [vmem:[#allocation8 + $0xa0] sm:$0xf]  ;;  %v2255_v38 = vld [vmem:[#allocation8 + $0xac] sm:$0xf0]  ;;  %v2088_v39 = vor.u32 %v2359_v36, %v2087_v33 }
  0x2a   :  { %v1799_v40 = vld [vmem:[#allocation8 + $0x1a0] sm:$0xf]  ;;  %v2287_v41 = vld [vmem:[#allocation8 + $0x1ac] sm:$0xf0]  ;;  %1044 = vmatpush.bf16.msrb.mxu2 %v1960_v35  ;;  %1019 = vmatpush.bf16.msrb.mxu0 %v1688_v30  ;;  %v1672_v46 = vor.u32 %v2255_v38, %v1671_v37 }
  0x2b   :  { %v1943_v42 = vld [vmem:[#allocation8 + $0x2c0] sm:$0xf]  ;;  %v2323_v43 = vld [vmem:[#allocation8 + $0x2cc] sm:$0xf0]  ;;  %1057 = vmatpush.bf16.msrb.mxu3 %v2088_v39  ;;  %1032 = vmatpush.bf16.msrb.mxu1 %v1816_v34  ;;  %v1800_v52 = vor.u32 %v2287_v41, %v1799_v40  ;;  %v2261_v41 = vld [vmem:[#allocation8 + $0xe4] sm:$0xf] }
  0x2c   :  { %v2071_v44 = vld [vmem:[#allocation8 + $0x3c0] sm:$0xf]  ;;  %v2355_v45 = vld [vmem:[#allocation8 + $0x3cc] sm:$0xf0]  ;;  %v1944_v47 = vor.u32 %v2323_v43, %v1943_v42  ;;  %v1705_v42 = vld [vmem:[#allocation8 + $0xf0] sm:$0xf0] }
  0x2d   :  { %v1655_v48 = vld [vmem:[#allocation8 + $0x80] sm:$0xf]  ;;  %v2251_v49 = vld [vmem:[#allocation8 + $0x8c] sm:$0xf0]  ;;  %v2072_v53 = vor.u32 %v2355_v45, %v2071_v44  ;;  %v2293_v43 = vld [vmem:[#allocation8 + $0x1e4] sm:$0xf] }
  0x2e   :  { %v1783_v50 = vld [vmem:[#allocation8 + $0x180] sm:$0xf]  ;;  %v147_v51 = vld [vmem:[#allocation1] sm:$0xff]  ;;  %1020 = vmatpush.bf16.msrb.mxu0 %v1672_v46  ;;  %1045 = vmatpush.bf16.msrb.mxu2 %v1944_v47  ;;  %v1656_v59 = vor.u32 %v2251_v49, %v1655_v48  ;;  %v2257_v49 = vld [vmem:[#allocation8 + $0xc4] sm:$0xf] }
  0x2f   :  { %v2283_v54 = vld [vmem:[#allocation8 + $0x18c] sm:$0xf0]  ;;  %v1927_v55 = vld [vmem:[#allocation8 + $0x2a0] sm:$0xf]  ;;  %1585 = vmatmul.msk.bf16.vlgmr.msra.gmra.mxu0 %vm164_vm1, %v147_v51  ;;  %1586 = vmatmul.msk.bf16.vlgmr.msra.gmra.mxu1 %vm164_vm1, %v147_v51  ;;  %v1833_v44 = vld [vmem:[#allocation8 + $0x1f0] sm:$0xf0] }
  0x30   :  { %v2319_v56 = vld [vmem:[#allocation8 + $0x2ac] sm:$0xf0]  ;;  %v2055_v57 = vld [vmem:[#allocation8 + $0x3a0] sm:$0xf]  ;;  %1587 = vmatmul.msk.bf16.vlgmr.msra.gmra.mxu2 %vm164_vm1, %v147_v51  ;;  %1588 = vmatmul.msk.bf16.vlgmr.msra.gmra.mxu3 %vm164_vm1, %v147_v51  ;;  %v1784_v63 = vor.u32 %v2283_v54, %v1783_v50  ;;  %v1708_v51 = vor.u32 %v2261_v41, %v1705_v42  ;;  %v2241_v42 = vld [vmem:[#allocation8 + $0x44] sm:$0xf] }
  0x31   :  { %v2351_v58 = vld [vmem:[#allocation8 + $0x3ac] sm:$0xf0]  ;;  %v1928_v60 = vor.u32 %v2319_v56, %v1927_v55  ;;  %v1639_v61 = vld [vmem:[#allocation8 + $0x60] sm:$0xf]  ;;  %1033 = vmatpush.bf16.msrb.mxu1 %v1800_v52  ;;  %1058 = vmatpush.bf16.msrb.mxu3 %v2072_v53  ;;  %v1689_v52 = vld [vmem:[#allocation8 + $0xd0] sm:$0xf0]  ;;  %v1836_v55 = vor.u32 %v2293_v43, %v1833_v44 }
  0x32   :  { %v2247_v62 = vld [vmem:[#allocation8 + $0x6c] sm:$0xf0]  ;;  %v2056_v0 = vor.u32 %v2351_v58, %v2055_v57  ;;  %v1767_v1 = vld [vmem:[#allocation8 + $0x160] sm:$0xf]  ;;  %1021 = vmatpush.bf16.msrb.mxu0 %v1656_v59  ;;  %v2289_v57 = vld [vmem:[#allocation8 + $0x1c4] sm:$0xf] }
  0x33   :  { %v1911_v2 = vld [vmem:[#allocation8 + $0x280] sm:$0xf]  ;;  %v2315_v3 = vld [vmem:[#allocation8 + $0x28c] sm:$0xf0]  ;;  %1046 = vmatpush.bf16.msrb.mxu2 %v1928_v60  ;;  %v1640_v7 = vor.u32 %v2247_v62, %v1639_v61  ;;  %v2325_v58 = vld [vmem:[#allocation8 + $0x2e4] sm:$0xf] }
  0x34   :  { %v2279_v4 = vld [vmem:[#allocation8 + $0x16c] sm:$0xf0]  ;;  %v2039_v5 = vld [vmem:[#allocation8 + $0x380] sm:$0xf]  ;;  %v1912_v8 = vor.u32 %v2315_v3, %v1911_v2  ;;  %v1961_v59 = vld [vmem:[#allocation8 + $0x2f0] sm:$0xf0]  ;;  %v1692_v2 = vor.u32 %v2257_v49, %v1689_v52 }
  0x35   :  { %v2347_v6 = vld [vmem:[#allocation8 + $0x38c] sm:$0xf0]  ;;  %v1623_v9 = vld [vmem:[#allocation8 + $0x40] sm:$0xf]  ;;  %1034 = vmatpush.bf16.msrb.mxu1 %v1784_v63  ;;  %1059 = vmatpush.bf16.msrb.mxu3 %v2056_v0  ;;  %v1768_v11 = vor.u32 %v2279_v4, %v1767_v1  ;;  %v1817_v60 = vld [vmem:[#allocation8 + $0x1d0] sm:$0xf0]  ;;  %v1964_v3 = vor.u32 %v2325_v58, %v1961_v59 }
  0x36   :  { %v2243_v10 = vld [vmem:[#allocation8 + $0x4c] sm:$0xf0]  ;;  %v2040_v12 = vor.u32 %v2347_v6, %v2039_v5  ;;  %v1751_v13 = vld [vmem:[#allocation8 + $0x140] sm:$0xf]  ;;  %1022 = vmatpush.bf16.msrb.mxu0 %v1640_v7  ;;  %v2357_v0 = vld [vmem:[#allocation8 + $0x3e4] sm:$0xf]  ;;  %v1820_v5 = vor.u32 %v2289_v57, %v1817_v60 }
  0x37   :  { %v1895_v14 = vld [vmem:[#allocation8 + $0x260] sm:$0xf]  ;;  %v2311_v15 = vld [vmem:[#allocation8 + $0x26c] sm:$0xf0]  ;;  %1047 = vmatpush.bf16.msrb.mxu2 %v1912_v8  ;;  %v1624_v19 = vor.u32 %v2243_v10, %v1623_v9  ;;  %v2089_v1 = vld [vmem:[#allocation8 + $0x3f0] sm:$0xf0] }
  0x38   :  { %v2275_v16 = vld [vmem:[#allocation8 + $0x14c] sm:$0xf0]  ;;  %v2023_v17 = vld [vmem:[#allocation8 + $0x360] sm:$0xf]  ;;  %v1896_v20 = vor.u32 %v2311_v15, %v1895_v14  ;;  %v2253_v4 = vld [vmem:[#allocation8 + $0xa4] sm:$0xf]  ;;  %v2092_v10 = vor.u32 %v2357_v0, %v2089_v1 }
  0x39   :  { %v2343_v18 = vld [vmem:[#allocation8 + $0x36c] sm:$0xf0]  ;;  %v1607_v21 = vld [vmem:[#allocation8 + $0x20] sm:$0xf]  ;;  %1035 = vmatpush.bf16.msrb.mxu1 %v1768_v11  ;;  %1060 = vmatpush.bf16.msrb.mxu3 %v2040_v12  ;;  %v1752_v23 = vor.u32 %v2275_v16, %v1751_v13  ;;  %v1673_v7 = vld [vmem:[#allocation8 + $0xb0] sm:$0xf0] }
  0x3a   :  { %v2239_v22 = vld [vmem:[#allocation8 + $0x2c] sm:$0xf0]  ;;  %v2024_v24 = vor.u32 %v2343_v18, %v2023_v17  ;;  %v1735_v25 = vld [vmem:[#allocation8 + $0x120] sm:$0xf]  ;;  %1023 = vmatpush.bf16.msrb.mxu0 %v1624_v19  ;;  %v2321_v8 = vld [vmem:[#allocation8 + $0x2c4] sm:$0xf]  ;;  %v1676_v15 = vor.u32 %v2253_v4, %v1673_v7 }
  0x3b   :  { %v1879_v26 = vld [vmem:[#allocation8 + $0x240] sm:$0xf]  ;;  %v2307_v27 = vld [vmem:[#allocation8 + $0x24c] sm:$0xf0]  ;;  %1048 = vmatpush.bf16.msrb.mxu2 %v1896_v20  ;;  %v1608_v31 = vor.u32 %v2239_v22, %v1607_v21  ;;  %v1945_v9 = vld [vmem:[#allocation8 + $0x2d0] sm:$0xf0] }
  0x3c   :  { %v2271_v28 = vld [vmem:[#allocation8 + $0x12c] sm:$0xf0]  ;;  %v2007_v29 = vld [vmem:[#allocation8 + $0x340] sm:$0xf]  ;;  %v1880_v32 = vor.u32 %v2307_v27, %v1879_v26  ;;  %v2285_v11 = vld [vmem:[#allocation8 + $0x1a4] sm:$0xf]  ;;  %v1948_v16 = vor.u32 %v2321_v8, %v1945_v9 }
  0x3d   :  { %v2339_v30 = vld [vmem:[#allocation8 + $0x34c] sm:$0xf0]  ;;  %v1591_v33 = vld [vmem:[#allocation8] sm:$0xf]  ;;  %1036 = vmatpush.bf16.msrb.mxu1 %v1752_v23  ;;  %1061 = vmatpush.bf16.msrb.mxu3 %v2024_v24  ;;  %v1736_v36 = vor.u32 %v2271_v28, %v1735_v25  ;;  %v1801_v12 = vld [vmem:[#allocation8 + $0x1b0] sm:$0xf0] }
  0x3e   :  { %v2235_v34 = vld [vmem:[#allocation8 + $0xc] sm:$0xf0]  ;;  %v1719_v35 = vld [vmem:[#allocation8 + $0x100] sm:$0xf]  ;;  %v2008_v37 = vor.u32 %v2339_v30, %v2007_v29  ;;  %1024 = vmatpush.bf16.msrb.mxu0 %v1608_v31  ;;  %v2353_v13 = vld [vmem:[#allocation8 + $0x3c4] sm:$0xf]  ;;  %v1804_v18 = vor.u32 %v2285_v11, %v1801_v12 }
  0x3f   :  { %v2267_v38 = vld [vmem:[#allocation8 + $0x10c] sm:$0xf0]  ;;  %v1863_v39 = vld [vmem:[#allocation8 + $0x220] sm:$0xf]  ;;  %1049 = vmatpush.bf16.msrb.mxu2 %v1880_v32  ;;  %v1592_v47 = vor.u32 %v2235_v34, %v1591_v33  ;;  %v2073_v14 = vld [vmem:[#allocation8 + $0x3d0] sm:$0xf0] }
  0x40   :  { %v2303_v40 = vld [vmem:[#allocation8 + $0x22c] sm:$0xf0]  ;;  %v1991_v45 = vld [vmem:[#allocation8 + $0x320] sm:$0xf]  ;;  %v1720_v50 = vor.u32 %v2267_v38, %v1719_v35  ;;  %v2249_v17 = vld [vmem:[#allocation8 + $0x84] sm:$0xf]  ;;  %v2076_v22 = vor.u32 %v2353_v13, %v2073_v14 }
  0x41   :  { %v2335_v46 = vld [vmem:[#allocation8 + $0x32c] sm:$0xf0]  ;;  %v1864_v48 = vor.u32 %v2303_v40, %v1863_v39  ;;  %1037 = vmatpush.bf16.msrb.mxu1 %v1736_v36  ;;  %1062 = vmatpush.bf16.msrb.mxu3 %v2008_v37  ;;  %v1847_v53 = vld [vmem:[#allocation8 + $0x200] sm:$0xf]  ;;  %v1657_v19 = vld [vmem:[#allocation8 + $0x90] sm:$0xf0] }
  0x42   :  { %v2299_v54 = vld [vmem:[#allocation8 + $0x20c] sm:$0xf0]  ;;  %v1992_v56 = vor.u32 %v2335_v46, %v1991_v45  ;;  %v1975_v61 = vld [vmem:[#allocation8 + $0x300] sm:$0xf]  ;;  %1025 = vmatpush.bf16.msrb.mxu0 %v1592_v47  ;;  %v2317_v20 = vld [vmem:[#allocation8 + $0x2a4] sm:$0xf]  ;;  %v1660_v27 = vor.u32 %v2249_v17, %v1657_v19 }
  0x43   :  { %v2331_v62 = vld [vmem:[#allocation8 + $0x30c] sm:$0xf0]  ;;  %1050 = vmatpush.bf16.msrb.mxu2 %v1864_v48  ;;  %v1848_v63 = vor.u32 %v2299_v54, %v1847_v53  ;;  %v1929_v21 = vld [vmem:[#allocation8 + $0x2b0] sm:$0xf0]  ;;  %v2281_v23 = vld [vmem:[#allocation8 + $0x184] sm:$0xf] }
  0x44   :  { %v1976_v6 = vor.u32 %v2331_v62, %v1975_v61  ;;  %v1785_v24 = vld [vmem:[#allocation8 + $0x190] sm:$0xf0]  ;;  %v2349_v25 = vld [vmem:[#allocation8 + $0x3a4] sm:$0xf]  ;;  %v1932_v28 = vor.u32 %v2317_v20, %v1929_v21  ;;  %v126_v21 = vld [vmem:[#allocation7] sm:$0xf] }
  0x45   :  { %1038 = vmatpush.bf16.msrb.mxu1 %v1720_v50  ;;  %1063 = vmatpush.bf16.msrb.mxu3 %v1992_v56  ;;  %v2057_v26 = vld [vmem:[#allocation8 + $0x3b0] sm:$0xf0]  ;;  %v2245_v29 = vld [vmem:[#allocation8 + $0x64] sm:$0xf]  ;;  %v1788_v30 = vor.u32 %v2281_v23, %v1785_v24  ;;  %v129_v23 = vperm.slane %v126_v21, 1 }
  0x46   :  { %1070 = vmatpush.bf16.msra.mxu0 %v1708_v51  ;;  %v1641_v31 = vld [vmem:[#allocation8 + $0x70] sm:$0xf0]  ;;  %v2313_v32 = vld [vmem:[#allocation8 + $0x284] sm:$0xf]  ;;  %v2060_v34 = vor.u32 %v2349_v25, %v2057_v26  ;;  %v1711_v26 = vld [vmem:[#allocation8 + $0xe8] sm:$0xf] }
  0x47   :  { %1051 = vmatpush.bf16.msrb.mxu2 %v1848_v63  ;;  %v1913_v33 = vld [vmem:[#allocation8 + $0x290] sm:$0xf0]  ;;  %v2277_v35 = vld [vmem:[#allocation8 + $0x164] sm:$0xf]  ;;  %v1644_v39 = vor.u32 %v2245_v29, %v1641_v31  ;;  %v2264_v29 = vld [vmem:[#allocation8 + $0xf4] sm:$0xf0] }
  0x48   :  { %v1769_v36 = vld [vmem:[#allocation8 + $0x170] sm:$0xf0]  ;;  %v2345_v37 = vld [vmem:[#allocation8 + $0x384] sm:$0xf]  ;;  %v1916_v40 = vor.u32 %v2313_v32, %v1913_v33  ;;  %v2296_v31 = vld [vmem:[#allocation8 + $0x1f4] sm:$0xf0] }
  0x49   :  { %1083 = vmatpush.bf16.msra.mxu1 %v1836_v55  ;;  %1064 = vmatpush.bf16.msrb.mxu3 %v1976_v6  ;;  %v2041_v38 = vld [vmem:[#allocation8 + $0x390] sm:$0xf0]  ;;  %v1772_v41 = vor.u32 %v2277_v35, %v1769_v36  ;;  %v2273_v45 = vld [vmem:[#allocation8 + $0x144] sm:$0xf]  ;;  %v131_v35 = vperm.slane %v126_v21, 3  ;;  %v1712_v36 = vor.u32 %v2264_v29, %v1711_v26 }
  0x4a   :  { %1071 = vmatpush.bf16.msra.mxu0 %v1692_v2  ;;  %v1625_v43 = vld [vmem:[#allocation8 + $0x50] sm:$0xf0]  ;;  %v2044_v44 = vor.u32 %v2345_v37, %v2041_v38  ;;  %v2309_v49 = vld [vmem:[#allocation8 + $0x264] sm:$0xf]  ;;  %v1695_v38 = vld [vmem:[#allocation8 + $0xc8] sm:$0xf] }
  0x4b   :  { %1096 = vmatpush.bf16.msra.mxu2 %v1964_v3  ;;  %v1753_v46 = vld [vmem:[#allocation8 + $0x150] sm:$0xf0]  ;;  %v1628_v47 = vor.u32 %v2241_v42, %v1625_v43  ;;  %v2341_v51 = vld [vmem:[#allocation8 + $0x364] sm:$0xf]  ;;  %v1823_v42 = vld [vmem:[#allocation8 + $0x1c8] sm:$0xf] }
  0x4c   :  { %v1756_v48 = vor.u32 %v2273_v45, %v1753_v46  ;;  %v1897_v50 = vld [vmem:[#allocation8 + $0x270] sm:$0xf0]  ;;  %v2237_v55 = vld [vmem:[#allocation8 + $0x24] sm:$0xf]  ;;  %v2292_v43 = vld [vmem:[#allocation8 + $0x1d4] sm:$0xf0] }
  0x4d   :  { %1084 = vmatpush.bf16.msra.mxu1 %v1820_v5  ;;  %1109 = vmatpush.bf16.msra.mxu3 %v2092_v10  ;;  %v1900_v52 = vor.u32 %v2309_v49, %v1897_v50  ;;  %v2025_v53 = vld [vmem:[#allocation8 + $0x370] sm:$0xf0]  ;;  %v2269_v58 = vld [vmem:[#allocation8 + $0x124] sm:$0xf]  ;;  %v2095_v49 = vld [vmem:[#allocation8 + $0x3e8] sm:$0xf] }
  0x4e   :  { %1072 = vmatpush.bf16.msra.mxu0 %v1676_v15  ;;  %v2028_v54 = vor.u32 %v2341_v51, %v2025_v53  ;;  %v1609_v56 = vld [vmem:[#allocation8 + $0x30] sm:$0xf0]  ;;  %v2305_v61 = vld [vmem:[#allocation8 + $0x244] sm:$0xf]  ;;  %v2316_v29 = vld [vmem:[#allocation8 + $0x294] sm:$0xf0] }
  0x4f   :  { %1097 = vmatpush.bf16.msra.mxu2 %v1948_v16  ;;  %v1612_v57 = vor.u32 %v2237_v55, %v1609_v56  ;;  %v1737_v59 = vld [vmem:[#allocation8 + $0x130] sm:$0xf0]  ;;  %v2337_v63 = vld [vmem:[#allocation8 + $0x344] sm:$0xf]  ;;  %v2360_v55 = vld [vmem:[#allocation8 + $0x3f4] sm:$0xf0] }
  0x50   :  { %v1740_v60 = vor.u32 %v2269_v58, %v1737_v59  ;;  %v1881_v62 = vld [vmem:[#allocation8 + $0x250] sm:$0xf0]  ;;  %v2233_v3 = vld [vmem:[#allocation8 + $0x4] sm:$0xf]  ;;  %v1679_v56 = vld [vmem:[#allocation8 + $0xa8] sm:$0xf] }
  0x51   :  { %1085 = vmatpush.bf16.msra.mxu1 %v1804_v18  ;;  %1110 = vmatpush.bf16.msra.mxu3 %v2076_v22  ;;  %v1884_v0 = vor.u32 %v2305_v61, %v1881_v62  ;;  %v2009_v1 = vld [vmem:[#allocation8 + $0x350] sm:$0xf0]  ;;  %v2265_v5 = vld [vmem:[#allocation8 + $0x104] sm:$0xf]  ;;  %v128_v22 = vperm.slane %v126_v21, 0 }
  0x52   :  { %1073 = vmatpush.bf16.msra.mxu0 %v1660_v27  ;;  %v2012_v2 = vor.u32 %v2337_v63, %v2009_v1  ;;  %v1593_v4 = vld [vmem:[#allocation8 + $0x10] sm:$0xf0]  ;;  %v2301_v9 = vld [vmem:[#allocation8 + $0x224] sm:$0xf]  ;;  %v1807_v58 = vld [vmem:[#allocation8 + $0x1a8] sm:$0xf]  ;;  %v2096_v63 = vor.u32 %v2360_v55, %v2095_v49 }
  0x53   :  { %1098 = vmatpush.bf16.msra.mxu2 %v1932_v28  ;;  %v1596_v6 = vor.u32 %v2233_v3, %v1593_v4  ;;  %v1721_v7 = vld [vmem:[#allocation8 + $0x110] sm:$0xf0]  ;;  %v2333_v12 = vld [vmem:[#allocation8 + $0x324] sm:$0xf]  ;;  %v2288_v59 = vld [vmem:[#allocation8 + $0x1b4] sm:$0xf0] }
  0x54   :  { %v1724_v8 = vor.u32 %v2265_v5, %v1721_v7  ;;  %v1865_v10 = vld [vmem:[#allocation8 + $0x230] sm:$0xf0]  ;;  %v2297_v15 = vld [vmem:[#allocation8 + $0x204] sm:$0xf]  ;;  %v1951_v1 = vld [vmem:[#allocation8 + $0x2c8] sm:$0xf]  ;;  %v1808_v5 = vor.u32 %v2288_v59, %v1807_v58 }
  0x55   :  { %1086 = vmatpush.bf16.msra.mxu1 %v1788_v30  ;;  %1111 = vmatpush.bf16.msra.mxu3 %v2060_v34  ;;  %v1868_v11 = vor.u32 %v2301_v9, %v1865_v10  ;;  %v1993_v13 = vld [vmem:[#allocation8 + $0x330] sm:$0xf0]  ;;  %v2329_v18 = vld [vmem:[#allocation8 + $0x304] sm:$0xf]  ;;  %v1839_v30 = vld [vmem:[#allocation8 + $0x1e8] sm:$0xf] }
  0x56   :  { %1074 = vmatpush.bf16.msra.mxu0 %v1644_v39  ;;  %v1996_v14 = vor.u32 %v2333_v12, %v1993_v13  ;;  %v1849_v16 = vld [vmem:[#allocation8 + $0x210] sm:$0xf0]  ;;  %v130_v34 = vperm.slane %v126_v21, 2  ;;  %v1840_v37 = vor.u32 %v2296_v31, %v1839_v30  ;;  %v2260_v39 = vld [vmem:[#allocation8 + $0xd4] sm:$0xf0] }
  0x57   :  { %1099 = vmatpush.bf16.msra.mxu2 %v1916_v40  ;;  %v1852_v17 = vor.u32 %v2297_v15, %v1849_v16  ;;  %v1977_v19 = vld [vmem:[#allocation8 + $0x310] sm:$0xf0]  ;;  %v1696_v46 = vor.u32 %v2260_v39, %v1695_v38  ;;  %v2356_v7 = vld [vmem:[#allocation8 + $0x3d4] sm:$0xf0]  ;;  %v1791_v10 = vld [vmem:[#allocation8 + $0x188] sm:$0xf] }
  0x58   :  { %v1980_v20 = vor.u32 %v2329_v18, %v1977_v19  ;;  %v2252_v9 = vld [vmem:[#allocation8 + $0x94] sm:$0xf0]  ;;  %v1935_v16 = vld [vmem:[#allocation8 + $0x2a8] sm:$0xf] }
  0x59   :  { %1087 = vmatpush.bf16.msra.mxu1 %v1772_v41  ;;  %1112 = vmatpush.bf16.msra.mxu3 %v2044_v44  ;;  %v2320_v19 = vld [vmem:[#allocation8 + $0x2b4] sm:$0xf0]  ;;  %v2047_v30 = vld [vmem:[#allocation8 + $0x388] sm:$0xf] }
  0x5a   :  { %1075 = vmatpush.bf16.msra.mxu0 %v1628_v47  ;;  %v1967_v47 = vld [vmem:[#allocation8 + $0x2e8] sm:$0xf]  ;;  %v2352_v21 = vld [vmem:[#allocation8 + $0x3b4] sm:$0xf0]  ;;  %v1936_v26 = vor.u32 %v2320_v19, %v1935_v16  ;;  %v2258_v16 = vld [vmem:[#allocation8 + $0xcc] sm:$0xf] }
  0x5b   :  { %1100 = vmatpush.bf16.msra.mxu2 %v1900_v52  ;;  %v2348_v31 = vld [vmem:[#allocation8 + $0x394] sm:$0xf0] }
  0x5c   :  { %v2048_v39 = vor.u32 %v2348_v31, %v2047_v30  ;;  %v2240_v49 = vld [vmem:[#allocation8 + $0x34] sm:$0xf0] }
  0x5d   :  { %1088 = vmatpush.bf16.msra.mxu1 %v1756_v48  ;;  %1113 = vmatpush.bf16.msra.mxu3 %v2028_v54  ;;  %v2328_v48 = vld [vmem:[#allocation8 + $0x2f4] sm:$0xf0]  ;;  %v1824_v54 = vor.u32 %v2292_v43, %v1823_v42  ;;  %v1903_v42 = vld [vmem:[#allocation8 + $0x268] sm:$0xf] }
  0x5e   :  { %1076 = vmatpush.bf16.msra.mxu0 %v1612_v57  ;;  %v2256_v57 = vld [vmem:[#allocation8 + $0xb4] sm:$0xf0]  ;;  %v1968_v62 = vor.u32 %v2328_v48, %v1967_v47  ;;  %v1615_v48 = vld [vmem:[#allocation8 + $0x28] sm:$0xf] }
  0x5f   :  { %1101 = vmatpush.bf16.msra.mxu2 %v1884_v0  ;;  %v1680_v0 = vor.u32 %v2256_v57, %v1679_v56  ;;  %v2312_v43 = vld [vmem:[#allocation8 + $0x274] sm:$0xf0]  ;;  %v2015_v56 = vld [vmem:[#allocation8 + $0x348] sm:$0xf]  ;;  %v1616_v58 = vor.u32 %v2240_v49, %v1615_v48  ;;  %v2250_v48 = vld [vmem:[#allocation8 + $0x8c] sm:$0xf] }
  0x60   :  { %v2308_v55 = vld [vmem:[#allocation8 + $0x254] sm:$0xf0]  ;;  %v1665_v49 = vld [vmem:[#allocation8 + $0x98] sm:$0xf0] }
  0x61   :  { %1089 = vmatpush.bf16.msra.mxu1 %v1740_v60  ;;  %1114 = vmatpush.bf16.msra.mxu3 %v2012_v2  ;;  %v2324_v2 = vld [vmem:[#allocation8 + $0x2d4] sm:$0xf0] }
  0x62   :  { %1077 = vmatpush.bf16.msra.mxu0 %v1596_v6  ;;  %v2079_v6 = vld [vmem:[#allocation8 + $0x3c8] sm:$0xf]  ;;  %v2340_v57 = vld [vmem:[#allocation8 + $0x354] sm:$0xf0] }
  0x63   :  { %1102 = vmatpush.bf16.msra.mxu2 %v1868_v11  ;;  %v2284_v11 = vld [vmem:[#allocation8 + $0x194] sm:$0xf0]  ;;  %v2080_v15 = vor.u32 %v2356_v7, %v2079_v6  ;;  %v2294_v6 = vld [vmem:[#allocation8 + $0x1ec] sm:$0xf]  ;;  %v1841_v7 = vld [vmem:[#allocation8 + $0x1f8] sm:$0xf0] }
  0x64   :  { %v1792_v18 = vor.u32 %v2284_v11, %v1791_v10  ;;  %v1999_v10 = vld [vmem:[#allocation8 + $0x328] sm:$0xf]  ;;  %v2336_v11 = vld [vmem:[#allocation8 + $0x334] sm:$0xf0] }
  0x65   :  { %1090 = vmatpush.bf16.msra.mxu1 %v1724_v8  ;;  %1115 = vmatpush.bf16.msra.mxu3 %v1996_v14  ;;  %v1663_v8 = vld [vmem:[#allocation8 + $0x88] sm:$0xf]  ;;  %v1952_v14 = vor.u32 %v2324_v2, %v1951_v1  ;;  %v1713_v1 = vld [vmem:[#allocation8 + $0xf8] sm:$0xf0] }
  0x67   :  { %1103 = vmatpush.bf16.msra.mxu2 %v1852_v17  ;;  %v1664_v17 = vor.u32 %v2252_v9, %v1663_v8  ;;  %v1871_v8 = vld [vmem:[#allocation8 + $0x228] sm:$0xf]  ;;  %v2304_v9 = vld [vmem:[#allocation8 + $0x234] sm:$0xf0] }
  0x68   :  { %v1872_v19 = vor.u32 %v2304_v9, %v1871_v8 }
  0x69   :  { %1116 = vmatpush.bf16.msra.mxu3 %v1980_v20  ;;  %v2063_v20 = vld [vmem:[#allocation8 + $0x3a8] sm:$0xf] }
  0xac   :  { %v189_v24 = vpop.f32.mrf.mxu0  ;;  %v202_v25 = vpop.f32.mrf.mxu1 }
  0xad   :  { %v190_v27 = vadd.f32 %v189_v24, %v128_v22  ;;  %v203_v28 = vadd.f32 %v202_v25, %v129_v23  ;;  %v1647_v22 = vld [vmem:[#allocation8 + $0x68] sm:$0xf]  ;;  %v2248_v23 = vld [vmem:[#allocation8 + $0x74] sm:$0xf0] }
  0xae   :  { %v1775_v24 = vld [vmem:[#allocation8 + $0x168] sm:$0xf]  ;;  %v2280_v25 = vld [vmem:[#allocation8 + $0x174] sm:$0xf0] }
  0xaf   :  { %v232_v32 = vmax.f32 %v190_v27, 0.0  ;;  %v233_v33 = vmax.f32 %v203_v28, 0.0  ;;  %v2064_v27 = vor.u32 %v2352_v21, %v2063_v20  ;;  %v1919_v28 = vld [vmem:[#allocation8 + $0x288] sm:$0xf]  ;;  %v2000_v20 = vor.u32 %v2336_v11, %v1999_v10  ;;  %v1825_v21 = vld [vmem:[#allocation8 + $0x1d8] sm:$0xf0] }
  0xb0   :  { %v1920_v38 = vor.u32 %v2316_v29, %v1919_v28  ;;  %v2358_v28 = vld [vmem:[#allocation8 + $0x3ec] sm:$0xf]  ;;  %v2097_v29 = vld [vmem:[#allocation8 + $0x3f8] sm:$0xf0] }
  0xb1   :  { %v2666_v40 = vpack.c.bf16 %v232_v32, %v232_v32  ;;  %v2668_v41 = vpack.c.bf16 %v233_v33, %v233_v33  ;;  %v1648_v32 = vor.u32 %v2248_v23, %v1647_v22  ;;  %v1776_v33 = vor.u32 %v2280_v25, %v1775_v24  ;;  %v1855_v22 = vld [vmem:[#allocation8 + $0x208] sm:$0xf]  ;;  %v2300_v23 = vld [vmem:[#allocation8 + $0x214] sm:$0xf0]  ;;  %v2242_v10 = vld [vmem:[#allocation8 + $0x4c] sm:$0xf] }
  0xb2   :  { %v1983_v24 = vld [vmem:[#allocation8 + $0x308] sm:$0xf]  ;;  %v2332_v25 = vld [vmem:[#allocation8 + $0x314] sm:$0xf0]  ;;  %v1633_v11 = vld [vmem:[#allocation8 + $0x58] sm:$0xf0] }
  0xb3   :  { %v215_v44 = vpop.f32.mrf.mxu2  ;;  %v228_v45 = vpop.f32.mrf.mxu3  ;;  %1026 = vmatmul.bf16.vlgmr.msrb.gmra.mxu0 %v2666_v40  ;;  %1039 = vmatmul.bf16.vlgmr.msrb.gmra.mxu1 %v2668_v41 }
  0xb4   :  { %v216_v50 = vadd.f32 %v215_v44, %v130_v34  ;;  %v229_v51 = vadd.f32 %v228_v45, %v131_v35  ;;  %1122 = vmatpush.bf16.msrb.mxu0 %v1712_v36  ;;  %1135 = vmatpush.bf16.msrb.mxu1 %v1840_v37  ;;  %v191_v52 = vpop.f32.mrf.mxu0  ;;  %v204_v53 = vpop.f32.mrf.mxu1  ;;  %v1631_v34 = vld [vmem:[#allocation8 + $0x48] sm:$0xf]  ;;  %v2244_v35 = vld [vmem:[#allocation8 + $0x54] sm:$0xf0] }
  0xb5   :  { %v1759_v36 = vld [vmem:[#allocation8 + $0x148] sm:$0xf]  ;;  %v2276_v37 = vld [vmem:[#allocation8 + $0x154] sm:$0xf0]  ;;  %v1904_v52 = vor.u32 %v2312_v43, %v1903_v42  ;;  %v2322_v42 = vld [vmem:[#allocation8 + $0x2cc] sm:$0xf] }
  0xb6   :  { %v234_v60 = vmax.f32 %v216_v50, 0.0  ;;  %v235_v61 = vmax.f32 %v229_v51, 0.0  ;;  %v2031_v44 = vld [vmem:[#allocation8 + $0x368] sm:$0xf]  ;;  %v2344_v45 = vld [vmem:[#allocation8 + $0x374] sm:$0xf0]  ;;  %v1760_v47 = vor.u32 %v2276_v37, %v1759_v36 }
  0xb7   :  { %v1743_v50 = vld [vmem:[#allocation8 + $0x128] sm:$0xf]  ;;  %v2272_v51 = vld [vmem:[#allocation8 + $0x134] sm:$0xf0]  ;;  %v2032_v53 = vor.u32 %v2344_v45, %v2031_v44  ;;  %v2286_v36 = vld [vmem:[#allocation8 + $0x1ac] sm:$0xf] }
  0xb8   :  { %v2672_v3 = vpack.c.bf16 %v234_v60, %v234_v60  ;;  %v2674_v4 = vpack.c.bf16 %v235_v61, %v235_v61  ;;  %1123 = vmatpush.bf16.msrb.mxu0 %v1696_v46  ;;  %1136 = vmatpush.bf16.msrb.mxu1 %v1824_v54  ;;  %v1632_v46 = vor.u32 %v2244_v35, %v1631_v34  ;;  %v1887_v54 = vld [vmem:[#allocation8 + $0x248] sm:$0xf]  ;;  %v2236_v61 = vld [vmem:[#allocation8 + $0x14] sm:$0xf0]  ;;  %v1681_v35 = vld [vmem:[#allocation8 + $0xb8] sm:$0xf0] }
  0xb9   :  { %v1744_v59 = vor.u32 %v2272_v51, %v1743_v50  ;;  %v1599_v60 = vld [vmem:[#allocation8 + $0x8] sm:$0xf]  ;;  %v1888_v2 = vor.u32 %v2308_v55, %v1887_v54  ;;  %v1984_v34 = vor.u32 %v2332_v25, %v1983_v24  ;;  %v1809_v37 = vld [vmem:[#allocation8 + $0x1b8] sm:$0xf0]  ;;  %v2354_v44 = vld [vmem:[#allocation8 + $0x3cc] sm:$0xf] }
  0xba   :  { %1052 = vmatmul.bf16.vlgmr.msrb.gmra.mxu2 %v2672_v3  ;;  %1065 = vmatmul.bf16.vlgmr.msrb.gmra.mxu3 %v2674_v4  ;;  %v1953_v43 = vld [vmem:[#allocation8 + $0x2d8] sm:$0xf0]  ;;  %v2282_v50 = vld [vmem:[#allocation8 + $0x18c] sm:$0xf] }
  0xbb   :  { %1148 = vmatpush.bf16.msrb.mxu2 %v1968_v62  ;;  %1161 = vmatpush.bf16.msrb.mxu3 %v2096_v63  ;;  %v217_v12 = vpop.f32.mrf.mxu2  ;;  %v230_v13 = vpop.f32.mrf.mxu3  ;;  %v1727_v62 = vld [vmem:[#allocation8 + $0x108] sm:$0xf]  ;;  %v2268_v63 = vld [vmem:[#allocation8 + $0x114] sm:$0xf0]  ;;  %v2081_v45 = vld [vmem:[#allocation8 + $0x3d8] sm:$0xf0] }
  0xbc   :  { %1124 = vmatpush.bf16.msrb.mxu0 %v1680_v0  ;;  %1137 = vmatpush.bf16.msrb.mxu1 %v1808_v5  ;;  %v2262_v0 = vld [vmem:[#allocation8 + $0xec] sm:$0xf]  ;;  %v2016_v5 = vor.u32 %v2340_v57, %v2015_v56  ;;  %v1600_v12 = vor.u32 %v2236_v61, %v1599_v60  ;;  %v1728_v13 = vor.u32 %v2268_v63, %v1727_v62  ;;  %v1793_v51 = vld [vmem:[#allocation8 + $0x198] sm:$0xf0] }
  0xbd   :  { %v2318_v54 = vld [vmem:[#allocation8 + $0x2ac] sm:$0xf]  ;;  %v1937_v55 = vld [vmem:[#allocation8 + $0x2b8] sm:$0xf0] }
  0xbe   :  { %v2350_v56 = vld [vmem:[#allocation8 + $0x3ac] sm:$0xf]  ;;  %v2065_v57 = vld [vmem:[#allocation8 + $0x3b8] sm:$0xf0] }
  0xbf   :  { %1149 = vmatpush.bf16.msrb.mxu2 %v1952_v14  ;;  %1162 = vmatpush.bf16.msrb.mxu3 %v2080_v15  ;;  %v1716_v14 = vor.u32 %v2262_v0, %v1713_v1  ;;  %v1844_v15 = vor.u32 %v2294_v6, %v1841_v7  ;;  %v2246_v60 = vld [vmem:[#allocation8 + $0x6c] sm:$0xf]  ;;  %v1649_v61 = vld [vmem:[#allocation8 + $0x78] sm:$0xf0]  ;;  %v1940_v0 = vor.u32 %v2318_v54, %v1937_v55  ;;  %v2367_v55 = vld [vmem:[#allocation11 + $0x30] sm:$0xff] }
  0xc0   :  { %1125 = vmatpush.bf16.msrb.mxu0 %v1664_v17  ;;  %1138 = vmatpush.bf16.msrb.mxu1 %v1792_v18  ;;  %v1697_v17 = vld [vmem:[#allocation8 + $0xd8] sm:$0xf0]  ;;  %v2290_v18 = vld [vmem:[#allocation8 + $0x1cc] sm:$0xf]  ;;  %v2068_v1 = vor.u32 %v2350_v56, %v2065_v57  ;;  %v1652_v8 = vor.u32 %v2246_v60, %v1649_v61 }
  0xc1   :  { %v1700_v30 = vor.u32 %v2258_v16, %v1697_v17  ;;  %v1828_v31 = vor.u32 %v2290_v18, %v1825_v21  ;;  %v2278_v62 = vld [vmem:[#allocation8 + $0x16c] sm:$0xf]  ;;  %v1777_v63 = vld [vmem:[#allocation8 + $0x178] sm:$0xf0] }
  0xc2   :  { %v2346_v6 = vld [vmem:[#allocation8 + $0x38c] sm:$0xf]  ;;  %v2049_v7 = vld [vmem:[#allocation8 + $0x398] sm:$0xf0]  ;;  %v1780_v9 = vor.u32 %v2278_v62, %v1777_v63  ;;  %v2363_v62 = vld [vmem:[#allocation11 + $0x10] sm:$0xff] }
  0xc3   :  { %1150 = vmatpush.bf16.msrb.mxu2 %v1936_v26  ;;  %1163 = vmatpush.bf16.msrb.mxu3 %v2064_v27  ;;  %v2326_v26 = vld [vmem:[#allocation8 + $0x2ec] sm:$0xf]  ;;  %v1969_v27 = vld [vmem:[#allocation8 + $0x2f8] sm:$0xf0]  ;;  %v2375_v63 = vld [vmem:[#allocation11 + $0x70] sm:$0xff] }
  0xc4   :  { %1078 = vmatmul.bf16.vlgmr.msra.gmra.mxu0 %v2666_v40  ;;  %1091 = vmatmul.bf16.vlgmr.msra.gmra.mxu1 %v2668_v41  ;;  %v2310_v16 = vld [vmem:[#allocation8 + $0x26c] sm:$0xf]  ;;  %v1905_v17 = vld [vmem:[#allocation8 + $0x278] sm:$0xf0] }
  0xc5   :  { %1126 = vmatpush.bf16.msrb.mxu0 %v1648_v32  ;;  %1139 = vmatpush.bf16.msrb.mxu1 %v1776_v33  ;;  %v2254_v32 = vld [vmem:[#allocation8 + $0xac] sm:$0xf]  ;;  %v1856_v33 = vor.u32 %v2300_v23, %v1855_v22  ;;  %v1617_v23 = vld [vmem:[#allocation8 + $0x38] sm:$0xf0] }
  0xc6   :  { %v2342_v18 = vld [vmem:[#allocation8 + $0x36c] sm:$0xf]  ;;  %v1745_v25 = vld [vmem:[#allocation8 + $0x138] sm:$0xf0] }
  0xc7   :  { %1151 = vmatpush.bf16.msrb.mxu2 %v1920_v38  ;;  %1164 = vmatpush.bf16.msrb.mxu3 %v2048_v39  ;;  %v1972_v38 = vor.u32 %v2326_v26, %v1969_v27  ;;  %v2100_v39 = vor.u32 %v2358_v28, %v2097_v29  ;;  %v2238_v22 = vld [vmem:[#allocation8 + $0x2c] sm:$0xf]  ;;  %v1908_v26 = vor.u32 %v2310_v16, %v1905_v17  ;;  %v1889_v29 = vld [vmem:[#allocation8 + $0x258] sm:$0xf0] }
  0xc8   :  { %v2270_v24 = vld [vmem:[#allocation8 + $0x12c] sm:$0xf]  ;;  %v1985_v54 = vld [vmem:[#allocation8 + $0x318] sm:$0xf0] }
  0xc9   :  { %1127 = vmatpush.bf16.msrb.mxu0 %v1632_v46  ;;  %1140 = vmatpush.bf16.msrb.mxu1 %v1760_v47  ;;  %v1684_v46 = vor.u32 %v2254_v32, %v1681_v35  ;;  %v1812_v47 = vor.u32 %v2286_v36, %v1809_v37  ;;  %v2306_v28 = vld [vmem:[#allocation8 + $0x24c] sm:$0xf]  ;;  %v1620_v32 = vor.u32 %v2238_v22, %v1617_v23  ;;  %v1601_v35 = vld [vmem:[#allocation8 + $0x18] sm:$0xf0] }
  0xca   :  { %1104 = vmatmul.bf16.vlgmr.msra.gmra.mxu2 %v2672_v3  ;;  %1117 = vmatmul.bf16.vlgmr.msra.gmra.mxu3 %v2674_v4  ;;  %v2266_v36 = vld [vmem:[#allocation8 + $0x10c] sm:$0xf]  ;;  %v1729_v37 = vld [vmem:[#allocation8 + $0x118] sm:$0xf0] }
  0xcb   :  { %1152 = vmatpush.bf16.msrb.mxu2 %v1904_v52  ;;  %1165 = vmatpush.bf16.msrb.mxu3 %v2032_v53  ;;  %v1956_v52 = vor.u32 %v2322_v42, %v1953_v43  ;;  %v2084_v53 = vor.u32 %v2354_v44, %v2081_v45  ;;  %v2302_v42 = vld [vmem:[#allocation8 + $0x22c] sm:$0xf]  ;;  %v1873_v43 = vld [vmem:[#allocation8 + $0x238] sm:$0xf0] }
  0xcc   :  { %v2334_v44 = vld [vmem:[#allocation8 + $0x32c] sm:$0xf]  ;;  %v2001_v45 = vld [vmem:[#allocation8 + $0x338] sm:$0xf0] }
  0xcd   :  { %1128 = vmatpush.bf16.msrb.mxu0 %v1616_v58  ;;  %1141 = vmatpush.bf16.msrb.mxu1 %v1744_v59  ;;  %v1668_v58 = vor.u32 %v2250_v48, %v1665_v49  ;;  %v1796_v59 = vor.u32 %v2282_v50, %v1793_v51  ;;  %v2368_v48 = vld [vmem:[#allocation11 + $0x38] sm:$0xff]  ;;  %v1876_v49 = vor.u32 %v2302_v42, %v1873_v43  ;;  %v2298_v51 = vld [vmem:[#allocation8 + $0x20c] sm:$0xf] }
  0xce   :  { %v2004_v50 = vor.u32 %v2334_v44, %v2001_v45  ;;  %v2376_v60 = vld [vmem:[#allocation11 + $0x78] sm:$0xff]  ;;  %v2378_v23 = vld [vmem:[#allocation11 + $0x88] sm:$0xff]  ;;  %v2389_v45 = vld [vmem:[#allocation11 + $0xe0] sm:$0xff] }
  0xcf   :  { %1153 = vmatpush.bf16.msrb.mxu2 %v1888_v2  ;;  %1166 = vmatpush.bf16.msrb.mxu3 %v2016_v5  ;;  %v2314_v2 = vld [vmem:[#allocation8 + $0x28c] sm:$0xf]  ;;  %v1921_v5 = vld [vmem:[#allocation8 + $0x298] sm:$0xf0] }
  0xd0   :  { %v2364_v61 = vld [vmem:[#allocation11 + $0x18] sm:$0xff] }
  0xd1   :  { %1129 = vmatpush.bf16.msrb.mxu0 %v1600_v12  ;;  %1142 = vmatpush.bf16.msrb.mxu1 %v1728_v13  ;;  %v2274_v12 = vld [vmem:[#allocation8 + $0x14c] sm:$0xf]  ;;  %v1761_v13 = vld [vmem:[#allocation8 + $0x158] sm:$0xf0] }
  0xd2   :  { %v1764_v21 = vor.u32 %v2274_v12, %v1761_v13  ;;  %v2369_v12 = vld [vmem:[#allocation11 + $0x40] sm:$0xff] }
  0xd3   :  { %1154 = vmatpush.bf16.msrb.mxu2 %v1872_v19  ;;  %1167 = vmatpush.bf16.msrb.mxu3 %v2000_v20  ;;  %v2033_v19 = vld [vmem:[#allocation8 + $0x378] sm:$0xf0]  ;;  %v1636_v20 = vor.u32 %v2242_v10, %v1633_v11  ;;  %v2381_v13 = vld [vmem:[#allocation11 + $0xa0] sm:$0xff] }
  0xd4   :  { %1130 = vmatmul.bf16.vlgmr.msrb.gmra.mxu0 %v2666_v40  ;;  %1143 = vmatmul.bf16.vlgmr.msrb.gmra.mxu1 %v2668_v41  ;;  %v2036_v27 = vor.u32 %v2342_v18, %v2033_v19  ;;  %v2379_v18 = vld [vmem:[#allocation11 + $0x90] sm:$0xff] }
  0xd5   :  { %1174 = vmatpush.bf16.msra.mxu0 %v1716_v14  ;;  %1187 = vmatpush.bf16.msra.mxu1 %v1844_v15  ;;  %v1924_v14 = vor.u32 %v2314_v2, %v1921_v5  ;;  %v2052_v15 = vor.u32 %v2346_v6, %v2049_v7  ;;  %v2371_v2 = vld [vmem:[#allocation11 + $0x50] sm:$0xff]  ;;  %v2370_v6 = vld [vmem:[#allocation11 + $0x48] sm:$0xff] }
  0xd6   :  { %v2383_v5 = vld [vmem:[#allocation11 + $0xb0] sm:$0xff]  ;;  %v2382_v7 = vld [vmem:[#allocation11 + $0xa8] sm:$0xff] }
  0xd7   :  { %1155 = vmatpush.bf16.msrb.mxu2 %v1856_v33  ;;  %1168 = vmatpush.bf16.msrb.mxu3 %v1984_v34  ;;  %v1748_v33 = vor.u32 %v2270_v24, %v1745_v25  ;;  %v2234_v34 = vld [vmem:[#allocation8 + $0xc] sm:$0xf] }
  0xd9   :  { %1175 = vmatpush.bf16.msra.mxu0 %v1700_v30  ;;  %1188 = vmatpush.bf16.msra.mxu1 %v1828_v31  ;;  %v2338_v30 = vld [vmem:[#allocation8 + $0x34c] sm:$0xf]  ;;  %v2017_v31 = vld [vmem:[#allocation8 + $0x358] sm:$0xf0] }
  0xda   :  { %1156 = vmatmul.bf16.vlgmr.msrb.gmra.mxu2 %v2672_v3  ;;  %1169 = vmatmul.bf16.vlgmr.msrb.gmra.mxu3 %v2674_v4 }
  0xdb   :  { %1200 = vmatpush.bf16.msra.mxu2 %v1972_v38  ;;  %1213 = vmatpush.bf16.msra.mxu3 %v2100_v39  ;;  %v1892_v38 = vor.u32 %v2306_v28, %v1889_v29  ;;  %v2020_v39 = vor.u32 %v2338_v30, %v2017_v31  ;;  %v2377_v28 = vld [vmem:[#allocation11 + $0x80] sm:$0xff]  ;;  %v2392_v29 = vld [vmem:[#allocation11 + $0xf8] sm:$0xff] }
  0xdd   :  { %1176 = vmatpush.bf16.msra.mxu0 %v1684_v46  ;;  %1189 = vmatpush.bf16.msra.mxu1 %v1812_v47  ;;  %v1604_v46 = vor.u32 %v2234_v34, %v1601_v35  ;;  %v1732_v47 = vor.u32 %v2266_v36, %v1729_v37  ;;  %v2391_v34 = vld [vmem:[#allocation11 + $0xf0] sm:$0xff]  ;;  %v2390_v36 = vld [vmem:[#allocation11 + $0xe8] sm:$0xff] }
  0xdf   :  { %1201 = vmatpush.bf16.msra.mxu2 %v1956_v52  ;;  %1214 = vmatpush.bf16.msra.mxu3 %v2084_v53  ;;  %v1857_v52 = vld [vmem:[#allocation8 + $0x218] sm:$0xf0]  ;;  %v2330_v53 = vld [vmem:[#allocation8 + $0x30c] sm:$0xf] }
  0xe0   :  { %v1860_v56 = vor.u32 %v2298_v51, %v1857_v52  ;;  %v1988_v57 = vor.u32 %v2330_v53, %v1985_v54 }
  0xe1   :  { %1177 = vmatpush.bf16.msra.mxu0 %v1668_v58  ;;  %1190 = vmatpush.bf16.msra.mxu1 %v1796_v59  ;;  %v2366_v58 = vld [vmem:[#allocation11 + $0x28] sm:$0xff]  ;;  %v2365_v59 = vld [vmem:[#allocation11 + $0x20] sm:$0xff] }
  0xe3   :  { %1202 = vmatpush.bf16.msra.mxu2 %v1940_v0  ;;  %1215 = vmatpush.bf16.msra.mxu3 %v2068_v1  ;;  %v2361_v0 = vld [vmem:[#allocation11] sm:$0xff] }
  0xe4   :  { %v2373_v1 = vld [vmem:[#allocation11 + $0x60] sm:$0xff] }
  0xe5   :  { %1178 = vmatpush.bf16.msra.mxu0 %v1652_v8  ;;  %1191 = vmatpush.bf16.msra.mxu1 %v1780_v9  ;;  %v2690_v8 = vld [vmem:[#allocation10] sm:$0xf] }
  0xe6   :  { %v370_v11 = vperm.slane %v2690_v8, 0  ;;  %v371_v31 = vperm.slane %v2690_v8, 1  ;;  %v372_v52 = vperm.slane %v2690_v8, 2 }
  0xe7   :  { %1203 = vmatpush.bf16.msra.mxu2 %v1924_v14  ;;  %1216 = vmatpush.bf16.msra.mxu3 %v2052_v15  ;;  %v2380_v15 = vld [vmem:[#allocation11 + $0x98] sm:$0xff] }
  0xe9   :  { %1179 = vmatpush.bf16.msra.mxu0 %v1636_v20  ;;  %1192 = vmatpush.bf16.msra.mxu1 %v1764_v21 }
  0xeb   :  { %1204 = vmatpush.bf16.msra.mxu2 %v1908_v26  ;;  %1217 = vmatpush.bf16.msra.mxu3 %v2036_v27 }
  0xed   :  { %1180 = vmatpush.bf16.msra.mxu0 %v1620_v32  ;;  %1193 = vmatpush.bf16.msra.mxu1 %v1748_v33 }
  0xef   :  { %1205 = vmatpush.bf16.msra.mxu2 %v1892_v38  ;;  %1218 = vmatpush.bf16.msra.mxu3 %v2020_v39 }
  0xf1   :  { %1181 = vmatpush.bf16.msra.mxu0 %v1604_v46  ;;  %1194 = vmatpush.bf16.msra.mxu1 %v1732_v47 }
  0xf3   :  { %1206 = vmatpush.bf16.msra.mxu2 %v1876_v49  ;;  %1219 = vmatpush.bf16.msra.mxu3 %v2004_v50  ;;  %v2388_v49 = vld [vmem:[#allocation11 + $0xd8] sm:$0xff] }
  0xf4   :  { %1182 = vmatmul.bf16.vlgmr.msra.gmra.mxu0 %v2666_v40  ;;  %1195 = vmatmul.bf16.vlgmr.msra.gmra.mxu1 %v2668_v41  ;;  %v2362_v40 = vld [vmem:[#allocation11 + $0x8] sm:$0xff] }
  0xf5   :  { %1494 = vmatpush.bf16.msrb.mxu0 %v2368_v48  ;;  %1507 = vmatpush.bf16.msrb.mxu1 %v2376_v60  ;;  %v2374_v41 = vld [vmem:[#allocation11 + $0x68] sm:$0xff] }
  0xf7   :  { %1207 = vmatpush.bf16.msra.mxu2 %v1860_v56  ;;  %1220 = vmatpush.bf16.msra.mxu3 %v1988_v57 }
  0xf9   :  { %1495 = vmatpush.bf16.msrb.mxu0 %v2367_v55  ;;  %1508 = vmatpush.bf16.msrb.mxu1 %v2375_v63  ;;  %v2387_v55 = vld [vmem:[#allocation11 + $0xd0] sm:$0xff]  ;;  %v2385_v63 = vld [vmem:[#allocation11 + $0xc0] sm:$0xff] }
  0xfa   :  { %1208 = vmatmul.bf16.vlgmr.msra.gmra.mxu2 %v2672_v3  ;;  %1221 = vmatmul.bf16.vlgmr.msra.gmra.mxu3 %v2674_v4  ;;  %v2372_v3 = vld [vmem:[#allocation11 + $0x58] sm:$0xff] }
  0xfb   :  { %v2384_v4 = vld [vmem:[#allocation11 + $0xb8] sm:$0xff]  ;;  %1533 = vmatpush.bf16.msrb.mxu3 %v2392_v29 }
  0xfc   :  { %1520 = vmatpush.bf16.msrb.mxu2 %v2384_v4 }
  0xfd   :  { %1496 = vmatpush.bf16.msrb.mxu0 %v2366_v58  ;;  %1509 = vmatpush.bf16.msrb.mxu1 %v2374_v41 }
  0xff   :  { %1534 = vmatpush.bf16.msrb.mxu3 %v2391_v34 }
 0x100   :  { %1521 = vmatpush.bf16.msrb.mxu2 %v2383_v5 }
 0x101   :  { %1497 = vmatpush.bf16.msrb.mxu0 %v2365_v59  ;;  %1510 = vmatpush.bf16.msrb.mxu1 %v2373_v1  ;;  %v2386_v59 = vld [vmem:[#allocation11 + $0xc8] sm:$0xff] }
 0x103   :  { %1535 = vmatpush.bf16.msrb.mxu3 %v2390_v36 }
 0x104   :  { %1522 = vmatpush.bf16.msrb.mxu2 %v2382_v7 }
 0x105   :  { %1498 = vmatpush.bf16.msrb.mxu0 %v2364_v61  ;;  %1511 = vmatpush.bf16.msrb.mxu1 %v2372_v3 }
 0x107   :  { %1536 = vmatpush.bf16.msrb.mxu3 %v2389_v45 }
 0x108   :  { %1523 = vmatpush.bf16.msrb.mxu2 %v2381_v13 }
 0x109   :  { %1499 = vmatpush.bf16.msrb.mxu0 %v2363_v62  ;;  %1512 = vmatpush.bf16.msrb.mxu1 %v2371_v2 }
 0x10b   :  { %1537 = vmatpush.bf16.msrb.mxu3 %v2388_v49 }
 0x10c   :  { %1524 = vmatpush.bf16.msrb.mxu2 %v2380_v15 }
 0x10d   :  { %1500 = vmatpush.bf16.msrb.mxu0 %v2362_v40  ;;  %1513 = vmatpush.bf16.msrb.mxu1 %v2370_v6  ;;  %v373_v6 = vperm.slane %v2690_v8, 3  ;;  %v2407_v8 = vld [vmem:[%s2708_s6] ss:$0 sm:$0xff] }
 0x10f   :  { %1538 = vmatpush.bf16.msrb.mxu3 %v2387_v55 }
 0x110   :  { %1525 = vmatpush.bf16.msrb.mxu2 %v2379_v18 }
 0x111   :  { %1501 = vmatpush.bf16.msrb.mxu0 %v2361_v0  ;;  %1514 = vmatpush.bf16.msrb.mxu1 %v2369_v12 }
 0x113   :  { %1539 = vmatpush.bf16.msrb.mxu3 %v2386_v59 }
 0x114   :  { %1526 = vmatpush.bf16.msrb.mxu2 %v2378_v23 }
 0x117   :  { %1540 = vmatpush.bf16.msrb.mxu3 %v2385_v63 }
 0x118   :  { %1527 = vmatpush.bf16.msrb.mxu2 %v2377_v28 }
 0x130   :  { %v1027_v9 = vpop.f32.mrf.mxu0  ;;  %v1040_v10 = vpop.f32.mrf.mxu1 }
 0x131   :  { %v1028_v14 = vadd.f32 %v1027_v9, %v370_v11 }
 0x133   :  { %v1041_v19 = vadd.f32 %v1040_v10, %v1028_v14 }
 0x138   :  { %v1029_v16 = vpop.f32.mrf.mxu0  ;;  %v1042_v17 = vpop.f32.mrf.mxu1 }
 0x13d   :  { %v1053_v20 = vpop.f32.mrf.mxu2  ;;  %v1066_v21 = vpop.f32.mrf.mxu3 }
 0x13e   :  { %v1054_v22 = vadd.f32 %v1053_v20, %v1041_v19 }
 0x140   :  { %v1067_v24 = vadd.f32 %v1066_v21, %v1054_v22 }
 0x141   :  { %v1079_v25 = vpop.f32.mrf.mxu0  ;;  %v1092_v26 = vpop.f32.mrf.mxu1 }
 0x142   :  { %v1226_v27 = vmax.f32 %v1067_v24, 0.0  ;;  %v1080_v35 = vadd.f32 %v1079_v25, %v371_v31 }
 0x144   :  { %v1230_v30 = vpack.c.bf16 %v1226_v27, %v1226_v27  ;;  %v1093_v39 = vadd.f32 %v1092_v26, %v1080_v35 }
 0x145   :  { %v1055_v32 = vpop.f32.mrf.mxu2  ;;  %v1068_v33 = vpop.f32.mrf.mxu3 }
 0x146   :  { %1502 = vmatmul.bf16.vlgmr.msrb.gmra.mxu0 %v1230_v30 }
 0x149   :  { %v1081_v37 = vpop.f32.mrf.mxu0  ;;  %v1094_v38 = vpop.f32.mrf.mxu1 }
 0x14d   :  { %v1105_v42 = vpop.f32.mrf.mxu2  ;;  %v1118_v43 = vpop.f32.mrf.mxu3 }
 0x14e   :  { %v1106_v44 = vadd.f32 %v1105_v42, %v1093_v39 }
 0x150   :  { %v1119_v46 = vadd.f32 %v1118_v43, %v1106_v44 }
 0x151   :  { %v1131_v47 = vpop.f32.mrf.mxu0  ;;  %v1144_v48 = vpop.f32.mrf.mxu1 }
 0x152   :  { %v1227_v50 = vmax.f32 %v1119_v46, 0.0  ;;  %v1132_v56 = vadd.f32 %v1131_v47, %v372_v52 }
 0x154   :  { %v1231_v51 = vpack.c.bf16 %v1227_v50, %v1227_v50  ;;  %v1145_v60 = vadd.f32 %v1144_v48, %v1132_v56 }
 0x155   :  { %v1107_v53 = vpop.f32.mrf.mxu2  ;;  %v1120_v54 = vpop.f32.mrf.mxu3 }
 0x156   :  { %1515 = vmatmul.bf16.vlgmr.msrb.gmra.mxu1 %v1231_v51 }
 0x159   :  { %v1133_v57 = vpop.f32.mrf.mxu0  ;;  %v1146_v58 = vpop.f32.mrf.mxu1 }
 0x15d   :  { %v1157_v61 = vpop.f32.mrf.mxu2  ;;  %v1170_v62 = vpop.f32.mrf.mxu3 }
 0x15e   :  { %v1158_v40 = vadd.f32 %v1157_v61, %v1145_v60 }
 0x160   :  { %v1171_v41 = vadd.f32 %v1170_v62, %v1158_v40 }
 0x162   :  { %v1228_v0 = vmax.f32 %v1171_v41, 0.0 }
 0x164   :  { %v1232_v1 = vpack.c.bf16 %v1228_v0, %v1228_v0 }
 0x165   :  { %v1159_v3 = vpop.f32.mrf.mxu2  ;;  %v1172_v4 = vpop.f32.mrf.mxu3 }
 0x166   :  { %1528 = vmatmul.bf16.vlgmr.msrb.gmra.mxu2 %v1232_v1 }
 0x171   :  { %v1183_v2 = vpop.f32.mrf.mxu0  ;;  %v1196_v5 = vpop.f32.mrf.mxu1 }
 0x172   :  { %v1184_v7 = vadd.f32 %v1183_v2, %v373_v6 }
 0x174   :  { %v1197_v11 = vadd.f32 %v1196_v5, %v1184_v7 }
 0x179   :  { %v1185_v9 = vpop.f32.mrf.mxu0  ;;  %v1198_v10 = vpop.f32.mrf.mxu1 }
 0x17d   :  { %v1209_v12 = vpop.f32.mrf.mxu2  ;;  %v1222_v13 = vpop.f32.mrf.mxu3 }
 0x17e   :  { %v1210_v14 = vadd.f32 %v1209_v12, %v1197_v11 }
 0x180   :  { %v1223_v15 = vadd.f32 %v1222_v13, %v1210_v14 }
 0x182   :  { %v1229_v16 = vmax.f32 %v1223_v15, 0.0 }
 0x184   :  { %v1233_v17 = vpack.c.bf16 %v1229_v16, %v1229_v16 }
 0x185   :  { %v1211_v18 = vpop.f32.mrf.mxu2  ;;  %v1224_v19 = vpop.f32.mrf.mxu3 }
 0x186   :  { %1541 = vmatmul.bf16.vlgmr.msrb.gmra.mxu3 %v1233_v17 }
 0x1c3   :  { %v1503_v20 = vpop.f32.mrf.mxu0 }
 0x1c4   :  { %v1504_v26 = vadd.f32 %v2407_v8, %v1503_v20 }
 0x1cb   :  { %v1505_v21 = vpop.f32.mrf.mxu0 }
 0x1d3   :  { %v1516_v22 = vpop.f32.mrf.mxu1 }
 0x1d4   :  { %v1517_v27 = vadd.f32 %v1516_v22, %v1504_v26 }
 0x1db   :  { %v1518_v23 = vpop.f32.mrf.mxu1 }
 0x1e9   :  { %v1529_v24 = vpop.f32.mrf.mxu2 }
 0x1ea   :  { %v1530_v28 = vadd.f32 %v1529_v24, %v1517_v27 }
 0x1f1   :  { %v1531_v25 = vpop.f32.mrf.mxu2 }
 0x209   :  { %v1542_v29 = vpop.f32.mrf.mxu3 }
 0x20a   :  { %v1543_v30 = vadd.f32 %v1542_v29, %v1530_v28 }
 0x20c   :  { %1546 = vst [vmem:[#allocation13] sm:$0xff] %v1543_v30 }
 0x211   :  { %v1544_v31 = vpop.f32.mrf.mxu3 }
 0x212   :  { %1550 = vsyncadd [#allocation4], 96  ;;  %s1553_s11 = sshll.u32 %s2709_s7, 4  ;;  %s2597_s12 = smov [#allocation13]   ;;  %s1554_s11 = int_to_ptr.hbm [resolvable:$true] %s1553_s11 }
 0x213   :  { %s1551_s13 = sshll.u32 %s2597_s12, 4  ;;  %s2598_s14 = smov 32   ;;  %s1552_s13 = int_to_ptr.vmem [resolvable:$true] %s1551_s13 }
 0x214   :  { %s2599_s15 = smov 2  }
 0x215   :  { %1559 = dma.vmem_to_hbm [thread:$0]  %s1552_s13, 32, %s1554_s11, [#allocation4], %s2598_s14, %s2598_s14, %s2599_s15  }
 0x216   :  { %2584 = dma.done.wait [#allocation4], 128  }
 0x217   :  { %2585 = vsyncadd [#allocation4], 4294967168 }
 0x218   :  { %1564 = vsyncpa [#allocation3], 1 }
 0x219   :  { %1565 = vsyncpa [#allocation6], 1 }
 0x21a   :  { %1566 = vsyncpa [#allocation9], 1 }
 0x21b   :  { %1567 = vsyncpa [#allocation12], 1 }
 0x21c   :  { %1568 = vsyncpa [#allocation4], 1 }

</bundles_post_ra>
